<compile_context>
chip_gen: v7x
topology: tpu7x:2x2x1
jax: 0.10.0
libtpu: 0.0.40
codegen_flags: <defaults>
</compile_context>

<pallas_src>
import jax
import jax.numpy as jnp
from jax.experimental import pallas as pl
from jax.experimental.pallas import tpu as pltpu  # noqa: F401  (kept for TPU-specific params if needed)

_BN_EPS = 1e-5
_NEG_INF = -1e30  # finite "minus infinity" for padded softmax lanes


def prob_network_kernel(x_ref, gb_ref, w1_ref, bias_ref, w2_ref, out_ref):
    # Whole (small) problem lives in one VMEM block; single grid step.
    x = x_ref[...]                                   # [B, D0] f32
    b = x.shape[0]
    inv_b = 1.0 / b
    d1 = w1_ref.shape[1]

    # --- BatchNorm1d, training mode, single pass over x ---
    s1 = jnp.sum(x, axis=0, keepdims=True)           # [1, D0]
    s2 = jnp.sum(x * x, axis=0, keepdims=True)       # [1, D0]
    mean = s1 * inv_b
    var = s2 * inv_b - mean * mean                   # biased variance
    gamma = gb_ref[0:1, :]                           # [1, D0]
    beta = gb_ref[1:2, :]                            # [1, D0]
    scale = gamma * jax.lax.rsqrt(var + _BN_EPS)     # [1, D0]
    shift = beta - mean * scale                      # [1, D0]
    x_bn = x * scale + shift                         # fused mul + add (VPU)

    # --- fc1 (bf16 MXU, f32 accumulate) + bias + ReLU ---
    h = jnp.dot(x_bn.astype(jnp.bfloat16), w1_ref[...],
                preferred_element_type=jnp.float32)  # [B, D1]
    h = h + bias_ref[0:1, :d1]
    h = jnp.maximum(h, 0.0)

    # --- fc2 (padded to 128 output lanes) + softmax(dim=-1) ---
    # Padded weight columns are zero and padded bias lanes are -1e30, so padded
    # logits underflow to exp(...) == 0 and do not perturb the softmax.
    logits = jnp.dot(h, w2_ref[...],
                     preferred_element_type=jnp.float32)      # [B, AP]
    logits = logits + bias_ref[1:2, :]
    m = jnp.max(logits, axis=-1, keepdims=True)
    e = jnp.exp(logits - m)
    denom = jnp.sum(e, axis=-1, keepdims=True)
    probs = e * pl.reciprocal(denom, approx=True)
    out_ref[...] = probs.astype(out_ref.dtype)


def prob_network_forward(s, params):
    """s: [B, C, H, W] float; params from init_params. Returns [B, num_actions] f32."""
    b = s.shape[0]
    x = s.reshape(b, -1).astype(jnp.float32)         # nn.Flatten (row-major, NCHW)

    gb = params["gb"]                                # [2, D0]      f32
    w1 = params["w1"]                                # [D0, D1]     bf16
    bias = params["bias"]                            # [2, W]       f32 (b1 row, padded b2 row)
    w2p = params["w2p"]                              # [D1, AP]     f32 (zero-padded columns)
    num_actions = params["num_actions"]
    ap = w2p.shape[1]

    full = lambda shape: pl.BlockSpec(shape, lambda: (0,) * len(shape))

    out_padded = pl.pallas_call(
        prob_network_kernel,
        out_shape=jax.ShapeDtypeStruct((b, ap), jnp.float32),
        grid=(),
        in_specs=[
            full(x.shape),
            full(gb.shape),
            full(w1.shape),
            full(bias.shape),
            full(w2p.shape),
        ],
        out_specs=full((b, ap)),
    )(x, gb, w1, bias, w2p)

    return out_padded[:, :num_actions]


def init_params(key, state_shape, mlp_layers, num_actions):
    d0 = 1
    for d in state_shape:
        d0 *= d
    d1 = mlp_layers[0]
    ap = max(128, ((num_actions + 127) // 128) * 128)     # lane-dense padded action dim
    bias_w = max(ap, ((d1 + 127) // 128) * 128)           # packed-bias lane width

    k1, k2, k3, k4 = jax.random.split(key, 4)

    # PyTorch Linear default init: U(-1/sqrt(fan_in), 1/sqrt(fan_in))
    bound1 = 1.0 / (d0 ** 0.5)
    bound2 = 1.0 / (d1 ** 0.5)

    w1 = jax.random.uniform(k1, (d0, d1), jnp.float32, -bound1, bound1)
    b1 = jax.random.uniform(k2, (d1,), jnp.float32, -bound1, bound1)
    w2 = jax.random.uniform(k3, (d1, num_actions), jnp.float32, -bound2, bound2)
    b2 = jax.random.uniform(k4, (num_actions,), jnp.float32, -bound2, bound2)

    # BatchNorm1d affine params (torch defaults: gamma=1, beta=0), packed [2, D0].
    gb = jnp.concatenate(
        [jnp.ones((1, d0), jnp.float32), jnp.zeros((1, d0), jnp.float32)], axis=0)

    # Pack biases: row 0 = b1 (zero-padded), row 1 = b2 padded with -1e30 so the
    # padded softmax lanes vanish.
    b1_row = jnp.zeros((bias_w,), jnp.float32).at[:d1].set(b1)
    b2_row = jnp.full((bias_w,), _NEG_INF, jnp.float32).at[:num_actions].set(b2)
    bias = jnp.stack([b1_row, b2_row], axis=0)             # [2, bias_w]

    # Zero-pad fc2 weight columns out to the lane-dense width.
    w2p = jnp.zeros((d1, ap), jnp.float32).at[:, :num_actions].set(w2)

    return {
        "gb": gb,
        "w1": w1.astype(jnp.bfloat16),   # biggest operand shipped as bf16
        "bias": bias[:, :ap] if bias_w == ap else bias,    # keep width consistent w/ kernel slices
        "w2p": w2p,
        "num_actions": num_actions,
    }


if __name__ == "__main__":
    # Small shapes consistent with the module: state_shape -> flattened D0, one MLP layer.
    state_shape = (4, 16, 16)    # C, H, W  -> D0 = 1024
    mlp_layers = [32]
    num_actions = 2
    batch = 2

    key = jax.random.PRNGKey(0)
    k_in, k_par = jax.random.split(key)

    s = jax.random.normal(k_in, (batch,) + state_shape, jnp.float32)   # [B, C, H, W]
    params = init_params(k_par, state_shape, mlp_layers, num_actions)

    probs = prob_network_forward(s, params)
    jax.block_until_ready(probs)

    # Sanity: correct shape, valid probabilities, rows sum to ~1.
    row_sums = jnp.sum(probs, axis=-1)
    assert probs.shape == (batch, num_actions)
    assert bool(jnp.all(probs >= 0.0))
    assert bool(jnp.all(jnp.abs(row_sums - 1.0) < 1e-3))
    print("KERNEL_OK")
</pallas_src>

<mosaic_0001>
module attributes {stable_mosaic.version = 11 : i64} {
  func.func @prob_network_kernel(%arg0: memref<2x1024xf32, #tpu.memory_space<vmem>>, %arg1: memref<2x1024xf32, #tpu.memory_space<vmem>>, %arg2: memref<1024x32xbf16, #tpu.memory_space<vmem>>, %arg3: memref<2x128xf32, #tpu.memory_space<vmem>>, %arg4: memref<32x128xf32, #tpu.memory_space<vmem>>, %arg5: memref<2x128xf32, #tpu.memory_space<vmem>>) attributes {dimension_semantics = [], scalar_prefetch = 0 : i64, scratch_operands = 0 : i64, tpu.core_type = #tpu.core_type<tc>} {
    %c0 = arith.constant 0 : index
    %c0_0 = arith.constant 0 : index
    %0 = vector.load %arg0[%c0, %c0_0] : memref<2x1024xf32, #tpu.memory_space<vmem>>, vector<2x1024xf32>
    %cst = arith.constant dense<0.000000e+00> : vector<1024xf32>
    %1 = vector.multi_reduction <add>, %0, %cst [0] : vector<2x1024xf32> to vector<1024xf32>
    %2 = vector.shape_cast %1 : vector<1024xf32> to vector<1x1024xf32>
    %3 = arith.mulf %0, %0 : vector<2x1024xf32>
    %cst_1 = arith.constant dense<0.000000e+00> : vector<1024xf32>
    %4 = vector.multi_reduction <add>, %3, %cst_1 [0] : vector<2x1024xf32> to vector<1024xf32>
    %5 = vector.shape_cast %4 : vector<1024xf32> to vector<1x1024xf32>
    %cst_2 = arith.constant 5.000000e-01 : f32
    %6 = vector.broadcast %cst_2 : f32 to vector<1x1024xf32>
    %7 = arith.mulf %2, %6 : vector<1x1024xf32>
    %cst_3 = arith.constant 5.000000e-01 : f32
    %8 = vector.broadcast %cst_3 : f32 to vector<1x1024xf32>
    %9 = arith.mulf %5, %8 : vector<1x1024xf32>
    %10 = arith.mulf %7, %7 : vector<1x1024xf32>
    %11 = arith.subf %9, %10 : vector<1x1024xf32>
    %c0_4 = arith.constant 0 : index
    %c0_5 = arith.constant 0 : index
    %12 = vector.load %arg1[%c0_4, %c0_5] : memref<2x1024xf32, #tpu.memory_space<vmem>>, vector<1x1024xf32>
    %c1 = arith.constant 1 : index
    %c0_6 = arith.constant 0 : index
    %13 = vector.load %arg1[%c1, %c0_6] : memref<2x1024xf32, #tpu.memory_space<vmem>>, vector<1x1024xf32>
    %cst_7 = arith.constant 9.99999974E-6 : f32
    %14 = vector.broadcast %cst_7 : f32 to vector<1x1024xf32>
    %15 = arith.addf %11, %14 : vector<1x1024xf32>
    %16 = math.rsqrt %15 : vector<1x1024xf32>
    %17 = arith.mulf %12, %16 : vector<1x1024xf32>
    %18 = arith.mulf %7, %17 : vector<1x1024xf32>
    %19 = arith.subf %13, %18 : vector<1x1024xf32>
    %20 = vector.broadcast %17 : vector<1x1024xf32> to vector<2x1024xf32>
    %21 = arith.mulf %0, %20 : vector<2x1024xf32>
    %22 = vector.broadcast %19 : vector<1x1024xf32> to vector<2x1024xf32>
    %23 = arith.addf %21, %22 : vector<2x1024xf32>
    %24 = arith.truncf %23 : vector<2x1024xf32> to vector<2x1024xbf16>
    %c0_8 = arith.constant 0 : index
    %c0_9 = arith.constant 0 : index
    %25 = vector.load %arg2[%c0_8, %c0_9] : memref<1024x32xbf16, #tpu.memory_space<vmem>>, vector<1024x32xbf16>
    %cst_10 = arith.constant dense<0.000000e+00> : vector<2x32xf32>
    %26 = tpu.matmul %24, %25, %cst_10 {dimension_numbers = #tpu.dot_dimension_numbers<[1], [0], [0], [1], [0, 0, 1, 1], [], []>} : vector<2x1024xbf16>, vector<1024x32xbf16>, vector<2x32xf32> -> vector<2x32xf32>
    %c0_11 = arith.constant 0 : index
    %c0_12 = arith.constant 0 : index
    %27 = vector.load %arg3[%c0_11, %c0_12] : memref<2x128xf32, #tpu.memory_space<vmem>>, vector<1x32xf32>
    %28 = vector.broadcast %27 : vector<1x32xf32> to vector<2x32xf32>
    %29 = arith.addf %26, %28 : vector<2x32xf32>
    %cst_13 = arith.constant 0.000000e+00 : f32
    %30 = vector.broadcast %cst_13 : f32 to vector<2x32xf32>
    %31 = arith.maximumf %29, %30 : vector<2x32xf32>
    %c0_14 = arith.constant 0 : index
    %c0_15 = arith.constant 0 : index
    %32 = vector.load %arg4[%c0_14, %c0_15] : memref<32x128xf32, #tpu.memory_space<vmem>>, vector<32x128xf32>
    %cst_16 = arith.constant dense<0.000000e+00> : vector<2x128xf32>
    %33 = tpu.matmul %31, %32, %cst_16 {dimension_numbers = #tpu.dot_dimension_numbers<[1], [0], [0], [1], [0, 0, 1, 1], [], []>} : vector<2x32xf32>, vector<32x128xf32>, vector<2x128xf32> -> vector<2x128xf32>
    %c1_17 = arith.constant 1 : index
    %c0_18 = arith.constant 0 : index
    %34 = vector.load %arg3[%c1_17, %c0_18] : memref<2x128xf32, #tpu.memory_space<vmem>>, vector<1x128xf32>
    %35 = vector.broadcast %34 : vector<1x128xf32> to vector<2x128xf32>
    %36 = arith.addf %33, %35 : vector<2x128xf32>
    %cst_19 = arith.constant dense<0xFF800000> : vector<2xf32>
    %37 = vector.multi_reduction <maximumf>, %36, %cst_19 [1] : vector<2x128xf32> to vector<2xf32>
    %38 = vector.shape_cast %37 : vector<2xf32> to vector<2x1xf32>
    %39 = vector.broadcast %38 : vector<2x1xf32> to vector<2x128xf32>
    %40 = arith.subf %36, %39 : vector<2x128xf32>
    %41 = math.exp %40 : vector<2x128xf32>
    %cst_20 = arith.constant dense<0.000000e+00> : vector<2xf32>
    %42 = vector.multi_reduction <add>, %41, %cst_20 [1] : vector<2x128xf32> to vector<2xf32>
    %43 = vector.shape_cast %42 : vector<2xf32> to vector<2x1xf32>
    %44 = tpu.reciprocal %43 {approx = true} : vector<2x1xf32> -> vector<2x1xf32>
    %45 = vector.broadcast %44 : vector<2x1xf32> to vector<2x128xf32>
    %46 = arith.mulf %41, %45 : vector<2x128xf32>
    %c0_21 = arith.constant 0 : index
    %c0_22 = arith.constant 0 : index
    %47 = vector.load %arg5[%c0_21, %c0_22] : memref<2x128xf32, #tpu.memory_space<vmem>>, vector<2x128xf32>
    tpu.vector_store %arg5[%c0_21, %c0_22], %46 {strides = array<i32>} : memref<2x128xf32, #tpu.memory_space<vmem>>, vector<2x128xf32>,
    return
  }
}

</mosaic_0001>

<bundles_post_ra>
// kernel: tpu_custom_call.1
= control target key start
LH: loop header
LB: loop body
LE: loop exit
PB: predicated region body
PF: predicated region fallthrough
CT: control target
= control target key end

     0   :  { %v30_v30 = vlaneseq  ;;  %v1687_v35 = vmov 1983009808   ;;  %vm68_vm0 = vcmask 1041408   ;;  %s2118_s0 = inlined_call_operand.vmem [shape: f32[2,1024], index: 0, kind: input, shape index: {}]   ;;  %s2119_s1 = inlined_call_operand.vmem [shape: f32[2,1024], index: 1, kind: input, shape index: {}]   ;;  %s2120_s2 = inlined_call_operand.vmem [shape: bf16[1024,32], index: 2, kind: input, shape index: {}]   ;;  %s2121_s3 = inlined_call_operand.vmem [shape: f32[2,128], index: 3, kind: input, shape index: {}]   ;;  %s2122_s4 = inlined_call_operand.vmem [shape: f32[32,128], index: 4, kind: input, shape index: {}]   ;;  %s2123_s5 = inlined_call_operand.hbm [shape: f32[2,128], index: 5, kind: output, shape index: {}]  }
   0x1   :  { %v1577_v0 = vld [vmem:[%s2120_s2 + $0x40] sm:$0xff]   ;;  %v1581_v4 = vld [vmem:[%s2120_s2 + $0x48] sm:$0xff]   ;;  %v1585_v8 = vld [vmem:[%s2120_s2 + $0x50] sm:$0xff]   ;;  %v28_v36 = vunpack.c.l.s4 %v1687_v35 }
   0x2   :  { %v1578_v1 = vld [vmem:[%s2120_s2] sm:$0xff]   ;;  %1461 = vmatprep.subr.bf16.mxu0 %v1577_v0  ;;  %v1582_v5 = vld [vmem:[%s2120_s2 + $0x8] sm:$0xff]   ;;  %v1586_v9 = vld [vmem:[%s2120_s2 + $0x10] sm:$0xff]   ;;  %v1829_v37 = vshrl.u32 %v30_v30, 7 }
   0x3   :  { %v1579_v2 = vld [vmem:[%s2120_s2 + $0xc0] sm:$0xff]   ;;  %1462 = vmatpush3.bf16.msra.mxu0 %v1578_v1  ;;  %v1583_v6 = vld [vmem:[%s2120_s2 + $0xc8] sm:$0xff]   ;;  %v1587_v10 = vld [vmem:[%s2120_s2 + $0xd0] sm:$0xff]   ;;  %v29_v42 = vunpack.c.0.s8 %v28_v36 }
   0x4   :  { %v1580_v3 = vld [vmem:[%s2120_s2 + $0x80] sm:$0xff]   ;;  %1483 = vmatprep.subr.bf16.mxu1 %v1579_v2  ;;  %1463 = vmatprep.subr.bf16.mxu0 %v1581_v4  ;;  %v1584_v7 = vld [vmem:[%s2120_s2 + $0x88] sm:$0xff]   ;;  %v1588_v11 = vld [vmem:[%s2120_s2 + $0x90] sm:$0xff]  }
   0x5   :  { %1484 = vmatpush3.bf16.msra.mxu1 %v1580_v3  ;;  %v1589_v12 = vld [vmem:[%s2120_s2 + $0x58] sm:$0xff]   ;;  %v1593_v16 = vld [vmem:[%s2120_s2 + $0x60] sm:$0xff]   ;;  %v1597_v20 = vld [vmem:[%s2120_s2 + $0x68] sm:$0xff]   ;;  %v1846_v47 = vsub.s32 %v29_v42, %v1829_v37 }
   0x6   :  { %1485 = vmatprep.subr.bf16.mxu1 %v1583_v6  ;;  %v1590_v13 = vld [vmem:[%s2120_s2 + $0x18] sm:$0xff]   ;;  %v1594_v17 = vld [vmem:[%s2120_s2 + $0x20] sm:$0xff]   ;;  %v1598_v21 = vld [vmem:[%s2120_s2 + $0x28] sm:$0xff]  }
   0x7   :  { %1464 = vmatpush3.bf16.msra.mxu0 %v1582_v5  ;;  %v1591_v14 = vld [vmem:[%s2120_s2 + $0xd8] sm:$0xff]   ;;  %v1595_v18 = vld [vmem:[%s2120_s2 + $0xe0] sm:$0xff]   ;;  %v1599_v22 = vld [vmem:[%s2120_s2 + $0xe8] sm:$0xff]  }
   0x8   :  { %1465 = vmatprep.subr.bf16.mxu0 %v1585_v8  ;;  %v1592_v15 = vld [vmem:[%s2120_s2 + $0x98] sm:$0xff]   ;;  %v1596_v19 = vld [vmem:[%s2120_s2 + $0xa0] sm:$0xff]   ;;  %v1600_v23 = vld [vmem:[%s2120_s2 + $0xa8] sm:$0xff]  }
   0x9   :  { %1486 = vmatpush3.bf16.msra.mxu1 %v1584_v7  ;;  %v1601_v24 = vld [vmem:[%s2120_s2 + $0x70] sm:$0xff]   ;;  %v1605_v28 = vld [vmem:[%s2120_s2 + $0x78] sm:$0xff]   ;;  %v1822_v33 = vld [vmem:[%s2118_s0] sm:$0xff] }
   0xa   :  { %1487 = vmatprep.subr.bf16.mxu1 %v1587_v10  ;;  %v1602_v25 = vld [vmem:[%s2120_s2 + $0x30] sm:$0xff]   ;;  %v1606_v29 = vld [vmem:[%s2120_s2 + $0x38] sm:$0xff]   ;;  %v1827_v34 = vld [vmem:[%s2118_s0 + $0x8] sm:$0xff]  ;;  %v125_v38 = vmul.f32 %v1822_v33, %v1822_v33  ;;  %v26_v41 = vcombine.high %v1822_v33, %v1822_v33  ;;  %v33_v48 = vrot.slane %v1822_v33, %v1846_v47 }
   0xb   :  { %1466 = vmatpush3.bf16.msra.mxu0 %v1586_v9  ;;  %v1603_v26 = vld [vmem:[%s2120_s2 + $0xf0] sm:$0xff]   ;;  %v1607_v31 = vld [vmem:[%s2120_s2 + $0xf8] sm:$0xff]   ;;  %v126_v39 = vmul.f32 %v1827_v34, %v1827_v34  ;;  %v1611_v40 = vld [vmem:[%s2120_s2 + $0x140] sm:$0xff]   ;;  %v43_v43 = vcombine.high %v1827_v34, %v1827_v34  ;;  %v50_v50 = vrot.slane %v1827_v34, %v1846_v47 }
   0xc   :  { %1467 = vmatprep.subr.bf16.mxu0 %v1589_v12  ;;  %v1604_v27 = vld [vmem:[%s2120_s2 + $0xb0] sm:$0xff]   ;;  %v1608_v32 = vld [vmem:[%s2120_s2 + $0xb8] sm:$0xff]   ;;  %v129_v44 = vcombine.high %v125_v38, %v125_v38  ;;  %v1613_v46 = vld [vmem:[%s2120_s2 + $0x1c0] sm:$0xff]   ;;  %v40_v49 = vrot.slane %v26_v41, %v1846_v47  ;;  %v1855_v52 = vrot.slane %v125_v38, %v1846_v47  ;;  %v41_v56 = vcombine.high %v33_v48, %v33_v48 }
   0xd   :  { %1488 = vmatpush3.bf16.msra.mxu1 %v1588_v11  ;;  %v146_v45 = vcombine.high %v126_v39, %v126_v39  ;;  %v57_v51 = vrot.slane %v43_v43, %v1846_v47  ;;  %v1861_v54 = vrot.slane %v126_v39, %v1846_v47  ;;  %v58_v58 = vcombine.high %v50_v50, %v50_v50 }
   0xe   :  { %1489 = vmatprep.subr.bf16.mxu1 %v1591_v14  ;;  %v1858_v53 = vrot.slane %v129_v44, %v1846_v47  ;;  %v42_v57 = vcombine.high %v40_v49, %v40_v49  ;;  %v69_v60 = vsel %vm68_vm0, %v33_v48, 0.0  ;;  %v83_v61 = vsel %vm68_vm0, %v40_v49, 0.0 }
   0xf   :  { %1468 = vmatpush3.bf16.msra.mxu0 %v1590_v13  ;;  %v1864_v55 = vrot.slane %v146_v45, %v1846_v47  ;;  %v59_v59 = vcombine.high %v57_v51, %v57_v51  ;;  %v97_v62 = vsel %vm68_vm0, %v50_v50, 0.0  ;;  %v111_v63 = vsel %vm68_vm0, %v57_v51, 0.0 }
  0x10   :  { %1469 = vmatprep.subr.bf16.mxu0 %v1593_v16  ;;  %v70_v0 = vrot.slane %v69_v60, 4  ;;  %v76_v1 = vsel %vm68_vm0, %v41_v56, 0.0  ;;  %v84_v2 = vrot.slane %v83_v61, 4  ;;  %v90_v3 = vsel %vm68_vm0, %v42_v57, 0.0 }
  0x11   :  { %1490 = vmatpush3.bf16.msra.mxu1 %v1592_v15  ;;  %v77_v4 = vrot.slane %v76_v1, 4  ;;  %v91_v5 = vrot.slane %v90_v3, 4  ;;  %v98_v6 = vrot.slane %v97_v62, 4  ;;  %v104_v7 = vsel %vm68_vm0, %v58_v58, 0.0 }
  0x12   :  { %1491 = vmatprep.subr.bf16.mxu1 %v1595_v18  ;;  %v71_v8 = vadd.f32 %v70_v0, %v69_v60  ;;  %v85_v9 = vadd.f32 %v84_v2, %v83_v61  ;;  %v105_v10 = vrot.slane %v104_v7, 4  ;;  %v112_v11 = vrot.slane %v111_v63, 4 }
  0x13   :  { %1470 = vmatpush3.bf16.msra.mxu0 %v1594_v17  ;;  %v78_v12 = vadd.f32 %v77_v4, %v76_v1  ;;  %v92_v13 = vadd.f32 %v91_v5, %v90_v3  ;;  %v99_v14 = vadd.f32 %v98_v6, %v97_v62  ;;  %v118_v15 = vsel %vm68_vm0, %v59_v59, 0.0 }
  0x14   :  { %1471 = vmatprep.subr.bf16.mxu0 %v1597_v20  ;;  %v72_v16 = vrot.slane %v71_v8, 2  ;;  %v86_v17 = vrot.slane %v85_v9, 2  ;;  %v106_v18 = vadd.f32 %v105_v10, %v104_v7  ;;  %v144_v58 = vcombine.high %v1855_v52, %v1855_v52 }
  0x15   :  { %1492 = vmatpush3.bf16.msra.mxu1 %v1596_v19  ;;  %v113_v19 = vadd.f32 %v112_v11, %v111_v63  ;;  %v79_v20 = vrot.slane %v78_v12, 2  ;;  %v145_v59 = vcombine.high %v1858_v53, %v1858_v53  ;;  %v161_v61 = vcombine.high %v1861_v54, %v1861_v54 }
  0x16   :  { %1493 = vmatprep.subr.bf16.mxu1 %v1599_v22  ;;  %v100_v22 = vrot.slane %v99_v14, 2  ;;  %v162_v62 = vcombine.high %v1864_v55, %v1864_v55  ;;  %v171_v63 = vsel %vm68_vm0, %v1855_v52, 0.0  ;;  %v178_v1 = vsel %vm68_vm0, %v144_v58, 0.0 }
  0x17   :  { %1472 = vmatpush3.bf16.msra.mxu0 %v1598_v21  ;;  %v93_v21 = vrot.slane %v92_v13, 2  ;;  %v172_v0 = vrot.slane %v171_v63, 4  ;;  %v185_v2 = vsel %vm68_vm0, %v1858_v53, 0.0  ;;  %v192_v3 = vsel %vm68_vm0, %v145_v59, 0.0 }
  0x18   :  { %1473 = vmatprep.subr.bf16.mxu0 %v1601_v24  ;;  %v73_v24 = vadd.f32 %v72_v16, %v71_v8  ;;  %v101_v30 = vadd.f32 %v100_v22, %v99_v14  ;;  %v179_v5 = vrot.slane %v178_v1, 4  ;;  %v186_v6 = vrot.slane %v185_v2, 4 }
  0x19   :  { %1494 = vmatpush3.bf16.msra.mxu1 %v1600_v23  ;;  %v119_v23 = vrot.slane %v118_v15, 4  ;;  %v193_v7 = vrot.slane %v192_v3, 4  ;;  %v173_v8 = vadd.f32 %v172_v0, %v171_v63  ;;  %v206_v10 = vsel %vm68_vm0, %v161_v61, 0.0 }
  0x1a   :  { %1495 = vmatprep.subr.bf16.mxu1 %v1603_v26  ;;  %v107_v26 = vrot.slane %v106_v18, 2  ;;  %v102_v41 = vrot.slane %v101_v30, 1  ;;  %v213_v52 = vsel %vm68_vm0, %v1864_v55, 0.0  ;;  %v180_v11 = vadd.f32 %v179_v5, %v178_v1 }
  0x1b   :  { %1474 = vmatpush3.bf16.msra.mxu0 %v1602_v25  ;;  %v87_v25 = vadd.f32 %v86_v17, %v85_v9  ;;  %v199_v9 = vsel %vm68_vm0, %v1861_v54, 0.0  ;;  %v174_v53 = vrot.slane %v173_v8, 2  ;;  %v214_v16 = vrot.slane %v213_v52, 4 }
  0x1c   :  { %1475 = vmatprep.subr.bf16.mxu0 %v1605_v28  ;;  %v80_v28 = vadd.f32 %v79_v20, %v78_v12  ;;  %v108_v36 = vadd.f32 %v107_v26, %v106_v18  ;;  %v1882_v50 = vadd.f32 %v102_v41, %v101_v30  ;;  %v187_v12 = vadd.f32 %v186_v6, %v185_v2 }
  0x1d   :  { %1496 = vmatpush3.bf16.msra.mxu1 %v1604_v27  ;;  %v114_v27 = vrot.slane %v113_v19, 2  ;;  %v88_v35 = vrot.slane %v87_v25, 1  ;;  %v200_v14 = vrot.slane %v199_v9, 4  ;;  %v220_v17 = vsel %vm68_vm0, %v162_v62, 0.0 }
  0x1e   :  { %1497 = vmatprep.subr.bf16.mxu1 %v1607_v31  ;;  %v120_v31 = vadd.f32 %v119_v23, %v118_v15  ;;  %v81_v39 = vrot.slane %v80_v28, 1  ;;  %v109_v45 = vrot.slane %v108_v36, 1  ;;  %v207_v15 = vrot.slane %v206_v10, 4 }
  0x1f   :  { %1476 = vmatpush3.bf16.msra.mxu0 %v1606_v29  ;;  %v94_v29 = vadd.f32 %v93_v21, %v92_v13  ;;  %v115_v38 = vadd.f32 %v114_v27, %v113_v19  ;;  %v1876_v44 = vadd.f32 %v88_v35, %v87_v25  ;;  %v194_v13 = vadd.f32 %v193_v7, %v192_v3 }
  0x20   :  { %1505 = vmatprep.subr.bf16.mxu0 %v1611_v40  ;;  %v121_v42 = vrot.slane %v120_v31, 2  ;;  %v1878_v48 = vadd.f32 %v81_v39, %v80_v28  ;;  %v1884_v56 = vadd.f32 %v109_v45, %v108_v36  ;;  %v181_v18 = vrot.slane %v180_v11, 2 }
  0x21   :  { %1498 = vmatpush3.bf16.msra.mxu1 %v1608_v32  ;;  %v74_v32 = vrot.slane %v73_v24, 1  ;;  %v95_v40 = vrot.slane %v94_v29, 1  ;;  %v188_v19 = vrot.slane %v187_v12, 2  ;;  %v195_v20 = vrot.slane %v194_v13, 2 }
  0x22   :  { %1527 = vmatprep.subr.bf16.mxu1 %v1613_v46  ;;  %v116_v46 = vrot.slane %v115_v38, 1  ;;  %v122_v51 = vadd.f32 %v121_v42, %v120_v31  ;;  %v201_v21 = vadd.f32 %v200_v14, %v199_v9  ;;  %v175_v22 = vadd.f32 %v174_v53, %v173_v8 }
  0x23   :  { %v1874_v43 = vadd.f32 %v74_v32, %v73_v24  ;;  %v1880_v49 = vadd.f32 %v95_v40, %v94_v29  ;;  %v208_v54 = vadd.f32 %v207_v15, %v206_v10  ;;  %v215_v23 = vadd.f32 %v214_v16, %v213_v52 }
  0x24   :  { %v1886_v57 = vadd.f32 %v116_v46, %v115_v38  ;;  %v123_v60 = vrot.slane %v122_v51, 1  ;;  %v221_v24 = vrot.slane %v220_v17, 4  ;;  %v182_v25 = vadd.f32 %v181_v18, %v180_v11 }
  0x25   :  { %v189_v26 = vadd.f32 %v188_v19, %v187_v12  ;;  %v196_v55 = vadd.f32 %v195_v20, %v194_v13  ;;  %v202_v27 = vrot.slane %v201_v21, 2  ;;  %v176_v28 = vrot.slane %v175_v22, 1 }
  0x26   :  { %v124_v4 = vadd.f32 %v123_v60, %v122_v51  ;;  %v209_v29 = vrot.slane %v208_v54, 2  ;;  %v216_v30 = vrot.slane %v215_v23, 2  ;;  %v222_v31 = vadd.f32 %v221_v24, %v220_v17 }
  0x27   :  { %v183_v32 = vrot.slane %v182_v25, 1  ;;  %v190_v35 = vrot.slane %v189_v26, 1  ;;  %v197_v36 = vrot.slane %v196_v55, 1  ;;  %v203_v38 = vadd.f32 %v202_v27, %v201_v21 }
  0x28   :  { %v177_v39 = vadd.f32 %v176_v28, %v175_v22  ;;  %v210_v40 = vadd.f32 %v209_v29, %v208_v54  ;;  %v217_v41 = vadd.f32 %v216_v30, %v215_v23  ;;  %v223_v42 = vrot.slane %v222_v31, 2 }
  0x29   :  { %v184_v45 = vadd.f32 %v183_v32, %v182_v25  ;;  %v191_v46 = vadd.f32 %v190_v35, %v189_v26  ;;  %v198_v51 = vadd.f32 %v197_v36, %v196_v55  ;;  %v204_v58 = vrot.slane %v203_v38, 1 }
  0x2a   :  { %v211_v59 = vrot.slane %v210_v40, 1  ;;  %v218_v60 = vrot.slane %v217_v41, 1  ;;  %v224_v61 = vadd.f32 %v223_v42, %v222_v31  ;;  %v1909_v62 = vmul.f32 0.5, %v1874_v43 }
  0x2b   :  { %v205_v63 = vadd.f32 %v204_v58, %v203_v38  ;;  %v1912_v0 = vmul.f32 0.5, %v1878_v48  ;;  %v1915_v1 = vmul.f32 0.5, %v1876_v44  ;;  %v1918_v2 = vmul.f32 0.5, %v1880_v49 }
  0x2c   :  { %v212_v3 = vadd.f32 %v211_v59, %v210_v40  ;;  %v219_v5 = vadd.f32 %v218_v60, %v217_v41  ;;  %v225_v6 = vrot.slane %v224_v61, 1  ;;  %v1921_v7 = vmul.f32 0.5, %v1882_v50 }
  0x2d   :  { %v1924_v8 = vmul.f32 0.5, %v1884_v56  ;;  %v1927_v43 = vmul.f32 0.5, %v1886_v57  ;;  %v1929_v48 = vmul.f32 0.5, %v124_v4  ;;  %v235_v9 = vmul.f32 0.5, %v177_v39 }
  0x2e   :  { %v226_v44 = vadd.f32 %v225_v6, %v224_v61  ;;  %v236_v10 = vmul.f32 0.5, %v184_v45  ;;  %v237_v52 = vmul.f32 0.5, %v191_v46  ;;  %v238_v49 = vmul.f32 0.5, %v198_v51 }
  0x2f   :  { %v239_v11 = vmul.f32 0.5, %v205_v63  ;;  %v240_v12 = vmul.f32 0.5, %v212_v3  ;;  %v241_v13 = vmul.f32 0.5, %v219_v5  ;;  %v243_v50 = vmul.f32 %v1909_v62, %v1909_v62 }
  0x30   :  { %v242_v14 = vmul.f32 0.5, %v226_v44  ;;  %v244_v56 = vmul.f32 %v1912_v0, %v1912_v0  ;;  %v245_v57 = vmul.f32 %v1915_v1, %v1915_v1  ;;  %v246_v4 = vmul.f32 %v1918_v2, %v1918_v2 }
  0x31   :  { %10 = vsyncpa [#allocation3], 0  ;;  %v247_v53 = vmul.f32 %v1921_v7, %v1921_v7  ;;  %v248_v15 = vmul.f32 %v1924_v8, %v1924_v8  ;;  %v249_v16 = vmul.f32 %v1927_v43, %v1927_v43  ;;  %v250_v17 = vmul.f32 %v1929_v48, %v1929_v48  ;;  %s1692_s8 = smov [#allocation2]  }
  0x32   :  { %v251_v18 = vsub.f32 %v235_v9, %v243_v50  ;;  %v252_v19 = vsub.f32 %v236_v10, %v244_v56  ;;  %v253_v20 = vsub.f32 %v237_v52, %v245_v57  ;;  %v254_v21 = vsub.f32 %v238_v49, %v246_v4  ;;  %s1385_s9 = sshll.u32 %s1692_s8, 4  ;;  %s1386_s9 = int_to_ptr.vmem [resolvable:$true] %s1385_s9 }
  0x33   :  { %v255_v22 = vsub.f32 %v239_v11, %v247_v53  ;;  %v256_v54 = vsub.f32 %v240_v12, %v248_v15  ;;  %v257_v23 = vsub.f32 %v241_v13, %v249_v16  ;;  %v258_v55 = vsub.f32 %v242_v14, %v250_v17  ;;  %v259_v11 = vld [vmem:[%s2119_s1] ss:$2 sm:$0xff]  ;;  %p1668_p1 = scmp.lt.s32.totalorder %s1386_s9, %s1386_s9 }
  0x34   :  { %v262_v24 = vadd.f32 1e-05, %v251_v18  ;;  %v263_v25 = vadd.f32 1e-05, %v252_v19  ;;  %v264_v26 = vadd.f32 1e-05, %v253_v20 }
  0x35   :  { %v265_v27 = vadd.f32 1e-05, %v254_v21  ;;  %v266_v28 = vadd.f32 1e-05, %v255_v22  ;;  %v267_v29 = vadd.f32 1e-05, %v256_v54 }
  0x36   :  { %1643 = vrsqrt.f32 %v262_v24  ;;  %v268_v30 = vadd.f32 1e-05, %v257_v23  ;;  %v1688_v31 = vmov 1966171168   ;;  %v269_v35 = vadd.f32 1e-05, %v258_v55 }
  0x37   :  { %1645 = vrsqrt.f32 %v263_v25  ;;  %v291_v32 = vunpack.c.l.s4 %v1688_v31  ;;  %v340_v12 = vsub.s32 0, %v1829_v37  ;;  %v344_v50 = vsub.s32 1, %v1829_v37 }
  0x38   :  { %1647 = vrsqrt.f32 %v264_v26  ;;  %v348_v14 = vsub.s32 2, %v1829_v37  ;;  %v352_v56 = vsub.s32 3, %v1829_v37  ;;  %v356_v57 = vsub.s32 4, %v1829_v37 }
  0x39   :  { %1649 = vrsqrt.f32 %v265_v27  ;;  %v292_v36 = vunpack.c.0.s8 %v291_v32  ;;  %v360_v4 = vsub.s32 5, %v1829_v37  ;;  %v364_v53 = vsub.s32 6, %v1829_v37 }
  0x3a   :  { %1651 = vrsqrt.f32 %v266_v28  ;;  %v368_v15 = vsub.s32 7, %v1829_v37  ;;  %vm1690_vm1 = vmmov 0   ;;  %vm1293_vm2 = vcmask 261120  }
  0x3b   :  { %1653 = vrsqrt.f32 %v267_v29  ;;  %v295_v39 = vsub.s32 %v292_v36, %v1829_v37 }
  0x3c   :  { %1655 = vrsqrt.f32 %v268_v30 }
  0x3d   :  { %1657 = vrsqrt.f32 %v269_v35 }
  0x40   :  { %v1644_v38 = vpop.eup %1643 }
  0x41   :  { %v1646_v40 = vpop.eup %1645 }
  0x42   :  { %v1648_v41 = vpop.eup %1647  ;;  %v286_v42 = vcombine.low %v1644_v38, %v1646_v40 }
  0x43   :  { %v1650_v45 = vpop.eup %1649 }
  0x44   :  { %v1652_v46 = vpop.eup %1651  ;;  %v287_v51 = vcombine.low %v1648_v41, %v1650_v45  ;;  %v296_v58 = vrot.slane %v286_v42, %v295_v39 }
  0x45   :  { %v1654_v59 = vpop.eup %1653 }
  0x46   :  { %v1656_v60 = vpop.eup %1655  ;;  %v288_v61 = vcombine.low %v1652_v46, %v1654_v59  ;;  %v303_v63 = vrot.slane %v287_v51, %v295_v39 }
  0x47   :  { %v1658_v3 = vpop.eup %1657 }
  0x48   :  { %v289_v5 = vcombine.low %v1656_v60, %v1658_v3  ;;  %v310_v6 = vrot.slane %v288_v61, %v295_v39  ;;  %v318_v9 = vcombine.low %v296_v58, %v303_v63 }
  0x4a   :  { %v317_v44 = vrot.slane %v289_v5, %v295_v39  ;;  %v326_v52 = vrot.slane %v318_v9, %v295_v39 }
  0x4c   :  { %v319_v10 = vcombine.low %v310_v6, %v317_v44 }
  0x4e   :  { %v333_v49 = vrot.slane %v319_v10, %v295_v39 }
  0x50   :  { %v334_v13 = vcombine.low %v326_v52, %v333_v49 }
  0x52   :  { %v336_v16 = vmul.f32 %v334_v13, %v259_v11 }
  0x54   :  { %v341_v17 = vrot.slane %v336_v16, %v340_v12  ;;  %v345_v18 = vrot.slane %v336_v16, %v344_v50  ;;  %v349_v19 = vrot.slane %v336_v16, %v348_v14  ;;  %v353_v20 = vrot.slane %v336_v16, %v352_v56 }
  0x55   :  { %v357_v21 = vrot.slane %v336_v16, %v356_v57  ;;  %v361_v22 = vrot.slane %v336_v16, %v360_v4  ;;  %v365_v54 = vrot.slane %v336_v16, %v364_v53  ;;  %v369_v23 = vrot.slane %v336_v16, %v368_v15 }
  0x56   :  { %v378_v24 = vmul.f32 %v341_v17, %v1909_v62  ;;  %v379_v25 = vmul.f32 %v345_v18, %v1912_v0  ;;  %v380_v26 = vmul.f32 %v349_v19, %v1915_v1  ;;  %v381_v55 = vmul.f32 %v353_v20, %v1918_v2 }
  0x57   :  { %v382_v27 = vmul.f32 %v357_v21, %v1921_v7  ;;  %v383_v37 = vmul.f32 %v361_v22, %v1924_v8  ;;  %v384_v28 = vmul.f32 %v365_v54, %v1927_v43  ;;  %v385_v29 = vmul.f32 %v369_v23, %v1929_v48  ;;  %v1393_v43 = vld [vmem:[%s2119_s1 + $0x1] ss:$2 sm:$0xff] }
  0x58   :  { %v394_v30 = vcombine.low %v378_v24, %v379_v25  ;;  %v395_v31 = vcombine.low %v380_v26, %v381_v55  ;;  %v445_v40 = vcombine.low %v341_v17, %v345_v18  ;;  %v446_v41 = vcombine.low %v349_v19, %v353_v20  ;;  %v1612_v26 = vld [vmem:[%s2120_s2 + $0x100] sm:$0xff]  }
  0x59   :  { %v396_v32 = vcombine.low %v382_v27, %v383_v37  ;;  %v397_v35 = vcombine.low %v384_v28, %v385_v29  ;;  %v462_v2 = vcombine.low %v357_v21, %v361_v22  ;;  %v463_v42 = vcombine.low %v365_v54, %v369_v23  ;;  %v1615_v37 = vld [vmem:[%s2120_s2 + $0x148] sm:$0xff]  }
  0x5a   :  { %v404_v36 = vrot.slane %v394_v30, %v295_v39  ;;  %v411_v62 = vrot.slane %v395_v31, %v295_v39  ;;  %v453_v48 = vrot.slane %v445_v40, %v1846_v47  ;;  %v460_v46 = vrot.slane %v446_v41, %v1846_v47  ;;  %v1617_v31 = vld [vmem:[%s2120_s2 + $0x1c8] sm:$0xff]   ;;  %v1623_v40 = vld [vmem:[%s2120_s2 + $0x158] sm:$0xff]  }
  0x5b   :  { %v418_v38 = vrot.slane %v396_v32, %v295_v39  ;;  %v425_v0 = vrot.slane %v397_v35, %v295_v39  ;;  %v470_v51 = vrot.slane %v462_v2, %v1846_v47  ;;  %v477_v58 = vrot.slane %v463_v42, %v1846_v47  ;;  %v1616_v35 = vld [vmem:[%s2120_s2 + $0x108] sm:$0xff]   ;;  %v1625_v41 = vld [vmem:[%s2120_s2 + $0x1d8] sm:$0xff]   ;;  %v1627_v42 = vld [vmem:[%s2120_s2 + $0x160] sm:$0xff]  }
  0x5c   :  { %v426_v1 = vcombine.low %v404_v36, %v411_v62  ;;  %v461_v61 = vcombine.low %v453_v48, %v460_v46  ;;  %v1619_v36 = vld [vmem:[%s2120_s2 + $0x150] sm:$0xff]   ;;  %v1618_v62 = vld [vmem:[%s2120_s2 + $0x188] sm:$0xff]   ;;  %v1624_v2 = vld [vmem:[%s2120_s2 + $0x118] sm:$0xff]  }
  0x5d   :  { %v427_v7 = vcombine.low %v418_v38, %v425_v0  ;;  %v478_v63 = vcombine.low %v470_v51, %v477_v58  ;;  %v1621_v38 = vld [vmem:[%s2120_s2 + $0x1d0] sm:$0xff]   ;;  %v1630_v48 = vld [vmem:[%s2120_s2 + $0x1a0] sm:$0xff]   ;;  %v1633_v46 = vld [vmem:[%s2120_s2 + $0x1e8] sm:$0xff]  }
  0x5e   :  { %v434_v45 = vrot.slane %v426_v1, %v295_v39  ;;  %v481_v17 = vmul.f32 %v461_v61, %v1822_v33  ;;  %v1620_v0 = vld [vmem:[%s2120_s2 + $0x110] sm:$0xff]   ;;  %v1632_v51 = vld [vmem:[%s2120_s2 + $0x128] sm:$0xff]  }
  0x5f   :  { %v441_v8 = vrot.slane %v427_v7, %v295_v39  ;;  %v482_v20 = vmul.f32 %v478_v63, %v1827_v34  ;;  %v1622_v1 = vld [vmem:[%s2120_s2 + $0x190] sm:$0xff]   ;;  %v1626_v7 = vld [vmem:[%s2120_s2 + $0x198] sm:$0xff]  }
  0x60   :  { %v1635_v58 = vld [vmem:[%s2120_s2 + $0x170] sm:$0xff]   ;;  %v1639_v63 = vld [vmem:[%s2120_s2 + $0x178] sm:$0xff]  }
  0x61   :  { %v442_v59 = vcombine.low %v434_v45, %v441_v8  ;;  %v1629_v45 = vld [vmem:[%s2120_s2 + $0x1e0] sm:$0xff]   ;;  %v1636_v61 = vld [vmem:[%s2120_s2 + $0x130] sm:$0xff]  }
  0x62   :  { %v1628_v8 = vld [vmem:[%s2120_s2 + $0x120] sm:$0xff]  }
  0x63   :  { %v444_v60 = vsub.f32 %v1393_v43, %v442_v59  ;;  %v1631_v43 = vld [vmem:[%s2120_s2 + $0x168] sm:$0xff]  }
  0x64   :  { %v1634_v59 = vld [vmem:[%s2120_s2 + $0x1a8] sm:$0xff]  }
  0x65   :  { %v487_v3 = vrot.slane %v444_v60, %v340_v12  ;;  %v491_v5 = vrot.slane %v444_v60, %v344_v50  ;;  %v495_v6 = vrot.slane %v444_v60, %v348_v14  ;;  %v499_v39 = vrot.slane %v444_v60, %v352_v56 }
  0x66   :  { %v503_v9 = vrot.slane %v444_v60, %v356_v57  ;;  %v507_v44 = vrot.slane %v444_v60, %v360_v4  ;;  %v511_v10 = vrot.slane %v444_v60, %v364_v53  ;;  %v515_v52 = vrot.slane %v444_v60, %v368_v15  ;;  %v1637_v60 = vld [vmem:[%s2120_s2 + $0x1f0] sm:$0xff]  }
  0x67   :  { %v516_v49 = vcombine.low %v487_v3, %v491_v5  ;;  %v517_v11 = vcombine.low %v495_v6, %v499_v39  ;;  %v1638_v3 = vld [vmem:[%s2120_s2 + $0x1b0] sm:$0xff]   ;;  %v1641_v5 = vld [vmem:[%s2120_s2 + $0x1f8] sm:$0xff]  }
  0x68   :  { %v533_v13 = vcombine.low %v503_v9, %v507_v44  ;;  %v534_v16 = vcombine.low %v511_v10, %v515_v52  ;;  %v1640_v6 = vld [vmem:[%s2120_s2 + $0x138] sm:$0xff]   ;;  %v1284_v10 = vld [vmem:[%s2122_s4] sm:$0xff]  ;;  %v1285_v52 = vld [vmem:[%s2122_s4 + $0x8] sm:$0xff] }
  0x69   :  { %v524_v18 = vrot.slane %v516_v49, %v1846_v47  ;;  %v531_v19 = vrot.slane %v517_v11, %v1846_v47  ;;  %v1642_v39 = vld [vmem:[%s2120_s2 + $0x1b8] sm:$0xff]   ;;  %v1566_v49 = vpack.c.bf16 %v1285_v52, %v1284_v10  ;;  %v1689_v11 = vmov 0.0|0.0  }
  0x6a   :  { %v541_v12 = vrot.slane %v533_v13, %v1846_v47  ;;  %v548_v50 = vrot.slane %v534_v16, %v1846_v47  ;;  %v1286_v13 = vld [vmem:[%s2122_s4 + $0x10] sm:$0xff]  ;;  %v1287_v16 = vld [vmem:[%s2122_s4 + $0x18] sm:$0xff] }
  0x6b   :  { %v532_v14 = vcombine.low %v524_v18, %v531_v19  ;;  %v1691_v18 = vmov 0.0  }
  0x6c   :  { %v549_v56 = vcombine.low %v541_v12, %v548_v50 }
  0x6d   :  { %v552_v57 = vadd.f32 %v532_v14, %v481_v17  ;;  %v1569_v17 = vpack.c.bf16 %v1287_v16, %v1286_v13 }
  0x6e   :  { %v553_v4 = vadd.f32 %v549_v56, %v482_v20  ;;  %v1394_v20 = vld [vmem:[%s2121_s3] ss:$0 sm:$0xff] }
  0x6f   :  { %v563_v53 = vrot.slane %v552_v57, %v1846_v47  ;;  %v556_v15 = vcombine.high %v552_v57, %v552_v57 }
  0x70   :  { %v1982_v21 = vrot.slane %v553_v4, %v1846_v47  ;;  %v573_v33 = vcombine.high %v553_v4, %v553_v4 }
  0x71   :  { %v571_v22 = vcombine.high %v563_v53, %v563_v53  ;;  %v570_v54 = vrot.slane %v556_v15, %v1846_v47  ;;  %v598_v23 = vpack.c.bf16 %v563_v53, %v563_v53 }
  0x72   :  { %v588_v34 = vcombine.high %v1982_v21, %v1982_v21  ;;  %v1988_v24 = vrot.slane %v573_v33, %v1846_v47  ;;  %v1614_v47 = vld [vmem:[%s2120_s2 + $0x180] sm:$0xff]   ;;  %v602_v9 = vpack.c.bf16 %v1982_v21, %v1982_v21 }
  0x73   :  { %v599_v25 = vpack.c.bf16 %v571_v22, %v571_v22  ;;  %v572_v55 = vcombine.high %v570_v54, %v570_v54  ;;  %v600_v27 = vpack.c.bf16 %v570_v54, %v570_v54 }
  0x74   :  { %v589_v28 = vcombine.high %v1988_v24, %v1988_v24  ;;  %v603_v30 = vpack.c.bf16 %v588_v34, %v588_v34  ;;  %v604_v44 = vpack.c.bf16 %v1988_v24, %v1988_v24 }
  0x75   :  { %1155 = vmatprep.mubr.bf16.mxu0 %v599_v25  ;;  %v601_v29 = vpack.c.bf16 %v572_v55, %v572_v55 }
  0x76   :  { %1156 = vmatmul.mubr.bf16.vlgmr.msra.gmra.mrb[0].mxu0 %v598_v23  ;;  %v605_v32 = vpack.c.bf16 %v589_v28, %v589_v28 }
  0x77   :  { %1506 = vmatpush3.bf16.msra.mxu0 %v1612_v26  ;;  %1195 = vmatprep.mubr.bf16.mxu1 %v601_v29 }
  0x78   :  { %1196 = vmatmul.mubr.bf16.vlgmr.msra.gmra.mrb[0].mxu1 %v600_v27  ;;  %1507 = vmatprep.subr.bf16.mxu0 %v1615_v37 }
  0x79   :  { %1528 = vmatpush3.bf16.msra.mxu1 %v1614_v47  ;;  %1235 = vmatprep.mubr.bf16.mxu0 %v603_v30 }
  0x7a   :  { %1529 = vmatprep.subr.bf16.mxu1 %v1617_v31  ;;  %1275 = vmatprep.mubr.bf16.mxu1 %v605_v32  ;;  %v1459_v31 = vld [vmem:[%s2121_s3 + $0x1] ss:$0 sm:$0xff]  ;;  %s1663_s3 = scalar_lea.vmem %s1386_s9, 32 }
  0x7b   :  { %1508 = vmatpush3.bf16.msra.mxu0 %v1616_v35  ;;  %p1664_p0 = scmp.ne.s32.totalorder %s1386_s9, %s1663_s3  ;;  %p1669_p2 = scmp.lt.s32.totalorder %s1663_s3, %s1663_s3 }
  0x7c   :  { %1509 = vmatprep.subr.bf16.mxu0 %v1619_v36 }
  0x7d   :  { %1530 = vmatpush3.bf16.msra.mxu1 %v1618_v62  ;;  %p1670_p3 = por %p1669_p2, %p1668_p1 }
  0x7e   :  { %1531 = vmatprep.subr.bf16.mxu1 %v1621_v38 }
  0x7f   :  { %1510 = vmatpush3.bf16.msra.mxu0 %v1620_v0  ;;  %p1671_p4 = pnand %p1670_p3, %p1664_p0 }
  0x80   :  { %1511 = vmatprep.subr.bf16.mxu0 %v1623_v40 }
  0x81   :  { %1532 = vmatpush3.bf16.msra.mxu1 %v1622_v1 }
  0x82   :  { %1533 = vmatprep.subr.bf16.mxu1 %v1625_v41 }
  0x83   :  { %1512 = vmatpush3.bf16.msra.mxu0 %v1624_v2 }
  0x84   :  { %1513 = vmatprep.subr.bf16.mxu0 %v1627_v42 }
  0x85   :  { %1534 = vmatpush3.bf16.msra.mxu1 %v1626_v7 }
  0x86   :  { %1535 = vmatprep.subr.bf16.mxu1 %v1629_v45 }
  0x87   :  { %1514 = vmatpush3.bf16.msra.mxu0 %v1628_v8 }
  0x88   :  { %1515 = vmatprep.subr.bf16.mxu0 %v1631_v43 }
  0x89   :  { %1536 = vmatpush3.bf16.msra.mxu1 %v1630_v48 }
  0x8a   :  { %1537 = vmatprep.subr.bf16.mxu1 %v1633_v46 }
  0x8b   :  { %1516 = vmatpush3.bf16.msra.mxu0 %v1632_v51 }
  0x8c   :  { %1517 = vmatprep.subr.bf16.mxu0 %v1635_v58 }
  0x8d   :  { %1538 = vmatpush3.bf16.msra.mxu1 %v1634_v59 }
  0x8e   :  { %1539 = vmatprep.subr.bf16.mxu1 %v1637_v60 }
  0x8f   :  { %1518 = vmatpush3.bf16.msra.mxu0 %v1636_v61 }
  0x90   :  { %1519 = vmatprep.subr.bf16.mxu0 %v1639_v63 }
  0x91   :  { %1540 = vmatpush3.bf16.msra.mxu1 %v1638_v3 }
  0x92   :  { %1541 = vmatprep.subr.bf16.mxu1 %v1641_v5 }
  0x93   :  { %1520 = vmatpush3.bf16.msra.mxu0 %v1640_v6 }
  0x94   :  { %1565 = vmatprep.subr.bf16.mxu0 %v1689_v11 }
  0x95   :  { %1542 = vmatpush3.bf16.msra.mxu1 %v1642_v39 }
  0x96   :  { %1236 = vmatmul.mubr.bf16.vlgmr.msra.gmra.mrb[4].mxu0 %v602_v9 }
  0x97   :  { %1567 = vmatpush3.bf16.msra.mxu0 %v1566_v49  ;;  %1562 = vmatprep.mubr.msk.f32.mxu0 %vm1690_vm1, %v1691_v18 }
  0x98   :  { %1276 = vmatmul.mubr.bf16.vlgmr.msra.gmra.mrb[4].mxu1 %v604_v44  ;;  %1568 = vmatprep.subr.bf16.mxu0 %v1689_v11 }
  0x9b   :  { %1570 = vmatpush3.bf16.msra.mxu0 %v1569_v17 }
 0x149   :  { %v1477_v19 = vpop.f32.mrb[0].mxu0 }
 0x14a   :  { %v1478_v12 = vpop.f32.mrb[1].mxu0 }
 0x14b   :  { %v1479_v50 = vadd.f32 %v1478_v12, %v1477_v19  ;;  %v1480_v14 = vpop.f32.mrb[2].mxu0  ;;  %v1499_v56 = vpop.f32.mrb[0].mxu1 }
 0x14c   :  { %v1481_v57 = vpop.f32.mrb[3].mxu0  ;;  %v1500_v4 = vpop.f32.mrb[1].mxu1 }
 0x14d   :  { %v1158_v53 = vadd.f32 %v1479_v50, %v1394_v20  ;;  %v1501_v15 = vadd.f32 %v1500_v4, %v1499_v56  ;;  %v1502_v21 = vpop.f32.mrb[2].mxu1 }
 0x14e   :  { %v1503_v33 = vpop.f32.mrb[3].mxu1 }
 0x14f   :  { %v1198_v22 = vadd.f32 %v1501_v15, %v1158_v53 }
 0x169   :  { %v1521_v54 = vpop.f32.mrb[4].mxu0 }
 0x16a   :  { %v1522_v23 = vpop.f32.mrb[5].mxu0 }
 0x16b   :  { %v1523_v34 = vadd.f32 %v1522_v23, %v1521_v54  ;;  %v1524_v24 = vpop.f32.mrb[6].mxu0  ;;  %v1543_v25 = vpop.f32.mrb[4].mxu1 }
 0x16c   :  { %v1525_v26 = vpop.f32.mrb[7].mxu0  ;;  %v1544_v55 = vpop.f32.mrb[5].mxu1 }
 0x16d   :  { %v1238_v27 = vadd.f32 %v1523_v34, %v1198_v22  ;;  %v1545_v37 = vadd.f32 %v1544_v55, %v1543_v25  ;;  %v1546_v28 = vpop.f32.mrb[6].mxu1 }
 0x16e   :  { %v1547_v29 = vpop.f32.mrb[7].mxu1 }
 0x16f   :  { %v1278_v47 = vadd.f32 %v1545_v37, %v1238_v27 }
 0x171   :  { %v1283_v30 = vmax.f32 %v1278_v47, 0.0 }
 0x173   :  { %1563 = vmatmul.mubr.msk.f32.vlgmr.msra.gmra.mrb[8].mxu0 %vm1293_vm2, %v1283_v30 }
 0x246   :  { %v1363_v32 = vpop.f32.mrb[8].mxu0 }
 0x247   :  { %v1364_v35 = vadd.f32 %v1459_v31, %v1363_v32  ;;  %v1564_v36 = vpop.f32.mrb[9].mxu0 }
 0x249   :  { %v1367_v62 = vsel %vm68_vm0, %v1364_v35, -inf }
 0x24a   :  { %1368 = vmax.xlane.f32.xlu0 %v1367_v62 }
 0x2d7   :  { %v1369_v38 = vpop.xlane.xlu0 %1368 }
 0x2d8   :  { %v1370_v0 = vsub.f32 %v1364_v35, %v1369_v38 }
 0x2da   :  { %v1371_v40 = vmul.f32 1.442695, %v1370_v0 }
 0x2dc   :  { %1659 = vpow2.f32 %v1371_v40 }
 0x2e6   :  { %v1660_v1 = vpop.eup %1659 }
 0x2e7   :  { %v1373_v41 = vsel %vm68_vm0, %v1660_v1, 0.0 }
 0x2e8   :  { %1374 = vadd.xlane.f32.xlu0 %v1373_v41 }
 0x375   :  { %v1375_v2 = vpop.xlane.xlu0 %1374 }
 0x376   :  { %1661 = vrcp.f32 %v1375_v2 }
 0x380   :  { %v1662_v42 = vpop.eup %1661 }
 0x381   :  { %v1377_v7 = vmul.f32 %v1662_v42, %v1660_v1 }
 0x383   :  { %1378 = vst [vmem:[#allocation2] sm:$0x3] %v1377_v7 }
 0x384   :  { %1674 = shalt.err (!%p1671_p4)
}
 0x385   :  { %s1675_s12 = scalar_lea.hbm %s2123_s5, 32 }
 0x386   :  { %p1676_p5 = scmp.ne.s32.totalorder %s2123_s5, %s1675_s12  ;;  %p1679_p6 = scmp.lt.u32.totalorder %s1675_s12, %s2123_s5 }
 0x388   :  { %p1681_p7 = pnand %p1679_p6, %p1676_p5 }
 0x38a   :  { %1684 = shalt.err (!%p1681_p7)
}
 0x38b   :  { %1388 = dma.vmem_to_hbm [thread:$0]  %s1386_s9, 32, %s2123_s5, [#allocation3]  }
 0x38c   :  { %1685 = dma.done.wait [#allocation3], 32  }
 0x38d   :  { %1686 = vsyncadd [#allocation3], 4294967264 }
 0x38e   :  { %1392 = vsyncpa [#allocation3], 1 }

</bundles_post_ra>
